<compile_context>
chip_gen: v7x
topology: tpu7x:2x2x1
jax: 0.10.0
libtpu: 0.0.40
codegen_flags: <defaults>
</compile_context>

<pallas_src>
import math
import functools

import numpy as np
import jax
import jax.numpy as jnp
from jax import lax
from jax.experimental import pallas as pl
from jax.experimental.pallas import tpu as pltpu

DTYPE = jnp.float32


def _self_attention_kernel(x_ref, qkv_w_ref, qkv_b_ref, o_w_ref, o_b_ref, out_ref,
                           *, nhead, scale):
    """One grid step = one (sub-)batch block; everything stays VMEM/vreg resident.

    x_ref      : (Bblk, S, D)  float32
    qkv_w_ref  : (D, 3D)       bfloat16, columns permuted to [Q_all | K_all | V_all]
    qkv_b_ref  : (1, 3D)       float32,  same permutation
    o_w_ref    : (D, D)        bfloat16
    o_b_ref    : (1, D)        float32
    out_ref    : (Bblk, S, D)  float32
    """
    Bblk, S, D = x_ref.shape
    Dh = D // nhead

    x = x_ref[...].reshape(Bblk * S, D).astype(jnp.bfloat16)            # (Bblk*S, D)

    # One MXU matmul for the whole block; f32 accumulation, f32 bias add.
    qkv = jnp.dot(x, qkv_w_ref[...],
                  preferred_element_type=jnp.float32) + qkv_b_ref[...]  # (Bblk*S, 3D)

    q_all = qkv[:, 0 * D:1 * D]
    k_all = qkv[:, 1 * D:2 * D]
    v_all = qkv[:, 2 * D:3 * D]

    # Static loops: Bblk and nhead are tiny at this shape.
    # TODO(synk): switch to lax.fori_loop / a grid axis if nhead*S grows enough
    # that the unrolled live ranges start spilling vregs.
    vals_rows = []
    for b in range(Bblk):
        r0 = b * S
        head_outs = []
        for h in range(nhead):
            c0 = h * Dh
            q = q_all[r0:r0 + S, c0:c0 + Dh].astype(jnp.bfloat16)       # (S, Dh)
            k = k_all[r0:r0 + S, c0:c0 + Dh].astype(jnp.bfloat16)       # (S, Dh)
            v = v_all[r0:r0 + S, c0:c0 + Dh].astype(jnp.bfloat16)       # (S, Dh)

            # Contract the last dims of q and k directly: no explicit k.T,
            # no per-head XLU transpose push.
            logits = lax.dot_general(
                q, k, (((1,), (1,)), ((), ())),
                preferred_element_type=jnp.float32) * scale             # (S, S) f32

            m = jnp.max(logits, axis=-1, keepdims=True)
            p = jnp.exp(logits - m)
            denom = jnp.sum(p, axis=-1, keepdims=True)
            attn = p * pl.reciprocal(denom, approx=True)                # EUP slot

            head_outs.append(jnp.dot(attn.astype(jnp.bfloat16), v,
                                     preferred_element_type=jnp.float32))   # (S, Dh)
        vals_rows.append(jnp.concatenate(head_outs, axis=-1))           # (S, D)

    vals = vals_rows[0] if Bblk == 1 else jnp.concatenate(vals_rows, axis=0)  # (Bblk*S, D)

    # Single o_proj matmul over the whole block (K = D, not K = head_dim).
    out = jnp.dot(vals.astype(jnp.bfloat16), o_w_ref[...],
                  preferred_element_type=jnp.float32) + o_b_ref[...]    # (Bblk*S, D)
    out_ref[...] = out.reshape(Bblk, S, D).astype(out_ref.dtype)


def _vmem_limit_bytes(batch_block, S, D):
    """Working-set estimate (bytes) with headroom, replacing the hardcoded 4 MiB."""
    f32, bf16 = 4, 2
    rows = batch_block * S
    io = 2 * (rows * D * f32) * 2                                       # x + out blocks, double-buffered
    weights = 2 * (D * 3 * D * bf16 + D * D * bf16 + 3 * D * f32 + D * f32)
    interm = (rows * 3 * D * (f32 + bf16)                               # qkv (+ bf16 operand copies)
              + 2 * S * S * f32                                         # logits + probs (one head live)
              + rows * D * (f32 + bf16))                                # concatenated head outputs
    total = io + weights + 4 * interm                                   # 4x headroom for compiler temps
    return int(min(max(total, 2 * 1024 * 1024), 100 * 1024 * 1024))


def self_attention(x, qkv_w, qkv_b, o_w, o_b, *, nhead):
    """x: (B,S,D); qkv_w: (D,3D) stored (in,out); qkv_b: (3D,); o_w: (D,D); o_b: (D,) -> (B,S,D)."""
    B, S, D = x.shape
    assert D % nhead == 0
    Dh = D // nhead

    # ---- one-time weight prep (wrapper-side, free w.r.t. the kernel) --------
    # Permute qkv columns from torch's per-head [q_h|k_h|v_h] interleave to
    # [Q_all | K_all | V_all] with heads contiguous inside each part:
    #   new col (part p, head h, dim d)  <-  old col h*3*Dh + p*Dh + d
    perm = np.concatenate([np.arange(h * 3 * Dh + p * Dh, h * 3 * Dh + (p + 1) * Dh)
                           for p in range(3) for h in range(nhead)])
    qkv_w_p = qkv_w[:, perm].astype(jnp.bfloat16)                       # (D, 3D) bf16
    qkv_b_p = qkv_b[perm].reshape(1, 3 * D).astype(jnp.float32)
    o_w_b = o_w.astype(jnp.bfloat16)                                    # (D, D) bf16
    o_b_r = o_b.reshape(1, D).astype(jnp.float32)

    # ---- grid choice: one step unless per-sample compute clearly dominates
    # the ~0.35 us/step pipeline overhead (then split batch for v7x's 2 TCs). -
    per_sample_flops = 2 * S * D * (3 * D) + nhead * (4 * S * S * Dh) + 2 * S * D * D
    split_batch = (B > 1) and (per_sample_flops >= 2_000_000)
    b_blk = 1 if split_batch else B
    grid = (B,) if split_batch else (1,)
    sem = ("parallel",) if split_batch else ("arbitrary",)

    kernel = functools.partial(_self_attention_kernel,
                               nhead=nhead, scale=1.0 / math.sqrt(Dh))
    return pl.pallas_call(
        kernel,
        out_shape=jax.ShapeDtypeStruct((B, S, D), x.dtype),
        grid=grid,
        in_specs=[
            pl.BlockSpec((b_blk, S, D), lambda b: (b, 0, 0)),           # x block
            pl.BlockSpec((D, 3 * D), lambda b: (0, 0)),                 # qkv_w (resident)
            pl.BlockSpec((1, 3 * D), lambda b: (0, 0)),                 # qkv_b
            pl.BlockSpec((D, D), lambda b: (0, 0)),                     # o_w
            pl.BlockSpec((1, D), lambda b: (0, 0)),                     # o_b
        ],
        out_specs=pl.BlockSpec((b_blk, S, D), lambda b: (b, 0, 0)),
        compiler_params=pltpu.CompilerParams(
            dimension_semantics=sem,
            vmem_limit_bytes=_vmem_limit_bytes(b_blk, S, D),
        ),
    )(x, qkv_w_p, qkv_b_p, o_w_b, o_b_r)


# ------------------------- pure-JAX reference (the spec) ---------------------
def self_attention_ref(x, qkv_w, qkv_b, o_w, o_b, nhead):
    B, S, D = x.shape
    Dh = D // nhead
    hp = jax.lax.Precision.HIGHEST
    qkv = jnp.dot(x, qkv_w, precision=hp) + qkv_b                       # (B,S,3D)
    qkv = qkv.reshape(B, S, nhead, 3 * Dh).transpose(0, 2, 1, 3)        # (B,H,S,3Dh)
    q, k, v = jnp.split(qkv, 3, axis=-1)
    logits = jnp.einsum("bhqd,bhkd->bhqk", q, k, precision=hp) / math.sqrt(Dh)
    attn = jax.nn.softmax(logits, axis=-1)
    vals = jnp.einsum("bhqk,bhkd->bhqd", attn, v, precision=hp)
    vals = vals.transpose(0, 2, 1, 3).reshape(B, S, D)
    return jnp.dot(vals, o_w, precision=hp) + o_b


# ===================================== main ==================================
if __name__ == "__main__":
    B, S, D, NHEAD = 2, 8, 32, 2

    key = jax.random.PRNGKey(0)
    kx, kw1, kw2 = jax.random.split(key, 3)

    x = jax.random.normal(kx, (B, S, D), DTYPE)

    # Xavier-uniform init (as in the PyTorch module); weights stored (in, out),
    # biases zero (module._reset_parameters fills them with 0).
    lim_qkv = math.sqrt(6.0 / (D + 3 * D))
    qkv_w = jax.random.uniform(kw1, (D, 3 * D), DTYPE, -lim_qkv, lim_qkv)
    qkv_b = jnp.zeros((3 * D,), DTYPE)
    lim_o = math.sqrt(6.0 / (D + D))
    o_w = jax.random.uniform(kw2, (D, D), DTYPE, -lim_o, lim_o)
    o_b = jnp.zeros((D,), DTYPE)

    fwd = jax.jit(functools.partial(self_attention, nhead=NHEAD))
    out = jax.block_until_ready(fwd(x, qkv_w, qkv_b, o_w, o_b))

    ref = self_attention_ref(x, qkv_w, qkv_b, o_w, o_b, NHEAD)

    assert out.shape == (B, S, D), out.shape
    assert bool(jnp.all(jnp.isfinite(out)))
    max_err = float(jnp.max(jnp.abs(out - ref)))
    # bf16 MXU operands (f32 accumulate) + approx softmax reciprocal introduce
    # ~1e-2-scale rounding error vs. the f32 HIGHEST-precision reference.
    assert jnp.allclose(out, ref, atol=3e-2, rtol=3e-2), max_err
    print("KERNEL_OK")
</pallas_src>

<mosaic_0001>
module attributes {stable_mosaic.version = 11 : i64} {
  func.func @_self_attention_kernel(%arg0: i32, %arg1: memref<2x8x32xf32, #tpu.memory_space<vmem>>, %arg2: memref<32x96xbf16, #tpu.memory_space<vmem>>, %arg3: memref<1x96xf32, #tpu.memory_space<vmem>>, %arg4: memref<32x32xbf16, #tpu.memory_space<vmem>>, %arg5: memref<1x32xf32, #tpu.memory_space<vmem>>, %arg6: memref<2x8x32xf32, #tpu.memory_space<vmem>>) attributes {dimension_semantics = [#tpu.dimension_semantics<arbitrary>], iteration_bounds = array<i64: 1>, scalar_prefetch = 0 : i64, scratch_operands = 0 : i64, tpu.core_type = #tpu.core_type<tc>, window_params = [{transform_indices = @transform_0, window_bounds = array<i64: 2, 8, 32>}, {pipeline_mode = #tpu.pipeline_mode<synchronous>, transform_indices = @transform_1, window_bounds = array<i64: 32, 96>}, {pipeline_mode = #tpu.pipeline_mode<synchronous>, transform_indices = @transform_2, window_bounds = array<i64: 1, 96>}, {pipeline_mode = #tpu.pipeline_mode<synchronous>, transform_indices = @transform_3, window_bounds = array<i64: 32, 32>}, {pipeline_mode = #tpu.pipeline_mode<synchronous>, transform_indices = @transform_4, window_bounds = array<i64: 1, 32>}, {transform_indices = @transform_5, window_bounds = array<i64: 2, 8, 32>}]} {
    %c0 = arith.constant 0 : index
    %c0_0 = arith.constant 0 : index
    %c0_1 = arith.constant 0 : index
    %0 = vector.load %arg1[%c0, %c0_0, %c0_1] : memref<2x8x32xf32, #tpu.memory_space<vmem>>, vector<2x8x32xf32>
    %1 = vector.shape_cast %0 : vector<2x8x32xf32> to vector<16x32xf32>
    %2 = arith.truncf %1 : vector<16x32xf32> to vector<16x32xbf16>
    %c0_2 = arith.constant 0 : index
    %c0_3 = arith.constant 0 : index
    %3 = vector.load %arg2[%c0_2, %c0_3] : memref<32x96xbf16, #tpu.memory_space<vmem>>, vector<32x96xbf16>
    %cst = arith.constant dense<0.000000e+00> : vector<16x96xf32>
    %4 = tpu.matmul %2, %3, %cst {dimension_numbers = #tpu.dot_dimension_numbers<[1], [0], [0], [1], [0, 0, 1, 1], [], []>} : vector<16x32xbf16>, vector<32x96xbf16>, vector<16x96xf32> -> vector<16x96xf32>
    %c0_4 = arith.constant 0 : index
    %c0_5 = arith.constant 0 : index
    %5 = vector.load %arg3[%c0_4, %c0_5] : memref<1x96xf32, #tpu.memory_space<vmem>>, vector<1x96xf32>
    %6 = vector.broadcast %5 : vector<1x96xf32> to vector<16x96xf32>
    %7 = arith.addf %4, %6 : vector<16x96xf32>
    %8 = vector.extract_strided_slice %7 {offsets = [0, 0], sizes = [16, 32], strides = [1, 1]} : vector<16x96xf32> to vector<16x32xf32>
    %9 = vector.extract_strided_slice %7 {offsets = [0, 32], sizes = [16, 32], strides = [1, 1]} : vector<16x96xf32> to vector<16x32xf32>
    %10 = vector.extract_strided_slice %7 {offsets = [0, 64], sizes = [16, 32], strides = [1, 1]} : vector<16x96xf32> to vector<16x32xf32>
    %11 = vector.extract_strided_slice %8 {offsets = [0, 0], sizes = [8, 16], strides = [1, 1]} : vector<16x32xf32> to vector<8x16xf32>
    %12 = arith.truncf %11 : vector<8x16xf32> to vector<8x16xbf16>
    %13 = vector.extract_strided_slice %9 {offsets = [0, 0], sizes = [8, 16], strides = [1, 1]} : vector<16x32xf32> to vector<8x16xf32>
    %14 = arith.truncf %13 : vector<8x16xf32> to vector<8x16xbf16>
    %15 = vector.extract_strided_slice %10 {offsets = [0, 0], sizes = [8, 16], strides = [1, 1]} : vector<16x32xf32> to vector<8x16xf32>
    %16 = arith.truncf %15 : vector<8x16xf32> to vector<8x16xbf16>
    %cst_6 = arith.constant dense<0.000000e+00> : vector<8x8xf32>
    %17 = tpu.matmul %12, %14, %cst_6 {dimension_numbers = #tpu.dot_dimension_numbers<[1], [1], [0], [0], [0, 0, 1, 0], [], []>} : vector<8x16xbf16>, vector<8x16xbf16>, vector<8x8xf32> -> vector<8x8xf32>
    %cst_7 = arith.constant 2.500000e-01 : f32
    %18 = vector.broadcast %cst_7 : f32 to vector<8x8xf32>
    %19 = arith.mulf %17, %18 : vector<8x8xf32>
    %cst_8 = arith.constant dense<0xFF800000> : vector<8xf32>
    %20 = vector.multi_reduction <maximumf>, %19, %cst_8 [1] : vector<8x8xf32> to vector<8xf32>
    %21 = vector.shape_cast %20 : vector<8xf32> to vector<8x1xf32>
    %22 = vector.broadcast %21 : vector<8x1xf32> to vector<8x8xf32>
    %23 = arith.subf %19, %22 : vector<8x8xf32>
    %24 = math.exp %23 : vector<8x8xf32>
    %cst_9 = arith.constant dense<0.000000e+00> : vector<8xf32>
    %25 = vector.multi_reduction <add>, %24, %cst_9 [1] : vector<8x8xf32> to vector<8xf32>
    %26 = vector.shape_cast %25 : vector<8xf32> to vector<8x1xf32>
    %27 = tpu.reciprocal %26 {approx = true} : vector<8x1xf32> -> vector<8x1xf32>
    %28 = vector.broadcast %27 : vector<8x1xf32> to vector<8x8xf32>
    %29 = arith.mulf %24, %28 : vector<8x8xf32>
    %30 = arith.truncf %29 : vector<8x8xf32> to vector<8x8xbf16>
    %cst_10 = arith.constant dense<0.000000e+00> : vector<8x16xf32>
    %31 = tpu.matmul %30, %16, %cst_10 {dimension_numbers = #tpu.dot_dimension_numbers<[1], [0], [0], [1], [0, 0, 1, 1], [], []>} : vector<8x8xbf16>, vector<8x16xbf16>, vector<8x16xf32> -> vector<8x16xf32>
    %32 = vector.extract_strided_slice %8 {offsets = [0, 16], sizes = [8, 16], strides = [1, 1]} : vector<16x32xf32> to vector<8x16xf32>
    %33 = arith.truncf %32 : vector<8x16xf32> to vector<8x16xbf16>
    %34 = vector.extract_strided_slice %9 {offsets = [0, 16], sizes = [8, 16], strides = [1, 1]} : vector<16x32xf32> to vector<8x16xf32>
    %35 = arith.truncf %34 : vector<8x16xf32> to vector<8x16xbf16>
    %36 = vector.extract_strided_slice %10 {offsets = [0, 16], sizes = [8, 16], strides = [1, 1]} : vector<16x32xf32> to vector<8x16xf32>
    %37 = arith.truncf %36 : vector<8x16xf32> to vector<8x16xbf16>
    %cst_11 = arith.constant dense<0.000000e+00> : vector<8x8xf32>
    %38 = tpu.matmul %33, %35, %cst_11 {dimension_numbers = #tpu.dot_dimension_numbers<[1], [1], [0], [0], [0, 0, 1, 0], [], []>} : vector<8x16xbf16>, vector<8x16xbf16>, vector<8x8xf32> -> vector<8x8xf32>
    %cst_12 = arith.constant 2.500000e-01 : f32
    %39 = vector.broadcast %cst_12 : f32 to vector<8x8xf32>
    %40 = arith.mulf %38, %39 : vector<8x8xf32>
    %cst_13 = arith.constant dense<0xFF800000> : vector<8xf32>
    %41 = vector.multi_reduction <maximumf>, %40, %cst_13 [1] : vector<8x8xf32> to vector<8xf32>
    %42 = vector.shape_cast %41 : vector<8xf32> to vector<8x1xf32>
    %43 = vector.broadcast %42 : vector<8x1xf32> to vector<8x8xf32>
    %44 = arith.subf %40, %43 : vector<8x8xf32>
    %45 = math.exp %44 : vector<8x8xf32>
    %cst_14 = arith.constant dense<0.000000e+00> : vector<8xf32>
    %46 = vector.multi_reduction <add>, %45, %cst_14 [1] : vector<8x8xf32> to vector<8xf32>
    %47 = vector.shape_cast %46 : vector<8xf32> to vector<8x1xf32>
    %48 = tpu.reciprocal %47 {approx = true} : vector<8x1xf32> -> vector<8x1xf32>
    %49 = vector.broadcast %48 : vector<8x1xf32> to vector<8x8xf32>
    %50 = arith.mulf %45, %49 : vector<8x8xf32>
    %51 = arith.truncf %50 : vector<8x8xf32> to vector<8x8xbf16>
    %cst_15 = arith.constant dense<0.000000e+00> : vector<8x16xf32>
    %52 = tpu.matmul %51, %37, %cst_15 {dimension_numbers = #tpu.dot_dimension_numbers<[1], [0], [0], [1], [0, 0, 1, 1], [], []>} : vector<8x8xbf16>, vector<8x16xbf16>, vector<8x16xf32> -> vector<8x16xf32>
    %53 = tpu.concatenate %31, %52 in 1 : vector<8x16xf32>, vector<8x16xf32> -> vector<8x32xf32>
    %54 = vector.extract_strided_slice %8 {offsets = [8, 0], sizes = [8, 16], strides = [1, 1]} : vector<16x32xf32> to vector<8x16xf32>
    %55 = arith.truncf %54 : vector<8x16xf32> to vector<8x16xbf16>
    %56 = vector.extract_strided_slice %9 {offsets = [8, 0], sizes = [8, 16], strides = [1, 1]} : vector<16x32xf32> to vector<8x16xf32>
    %57 = arith.truncf %56 : vector<8x16xf32> to vector<8x16xbf16>
    %58 = vector.extract_strided_slice %10 {offsets = [8, 0], sizes = [8, 16], strides = [1, 1]} : vector<16x32xf32> to vector<8x16xf32>
    %59 = arith.truncf %58 : vector<8x16xf32> to vector<8x16xbf16>
    %cst_16 = arith.constant dense<0.000000e+00> : vector<8x8xf32>
    %60 = tpu.matmul %55, %57, %cst_16 {dimension_numbers = #tpu.dot_dimension_numbers<[1], [1], [0], [0], [0, 0, 1, 0], [], []>} : vector<8x16xbf16>, vector<8x16xbf16>, vector<8x8xf32> -> vector<8x8xf32>
    %cst_17 = arith.constant 2.500000e-01 : f32
    %61 = vector.broadcast %cst_17 : f32 to vector<8x8xf32>
    %62 = arith.mulf %60, %61 : vector<8x8xf32>
    %cst_18 = arith.constant dense<0xFF800000> : vector<8xf32>
    %63 = vector.multi_reduction <maximumf>, %62, %cst_18 [1] : vector<8x8xf32> to vector<8xf32>
    %64 = vector.shape_cast %63 : vector<8xf32> to vector<8x1xf32>
    %65 = vector.broadcast %64 : vector<8x1xf32> to vector<8x8xf32>
    %66 = arith.subf %62, %65 : vector<8x8xf32>
    %67 = math.exp %66 : vector<8x8xf32>
    %cst_19 = arith.constant dense<0.000000e+00> : vector<8xf32>
    %68 = vector.multi_reduction <add>, %67, %cst_19 [1] : vector<8x8xf32> to vector<8xf32>
    %69 = vector.shape_cast %68 : vector<8xf32> to vector<8x1xf32>
    %70 = tpu.reciprocal %69 {approx = true} : vector<8x1xf32> -> vector<8x1xf32>
    %71 = vector.broadcast %70 : vector<8x1xf32> to vector<8x8xf32>
    %72 = arith.mulf %67, %71 : vector<8x8xf32>
    %73 = arith.truncf %72 : vector<8x8xf32> to vector<8x8xbf16>
    %cst_20 = arith.constant dense<0.000000e+00> : vector<8x16xf32>
    %74 = tpu.matmul %73, %59, %cst_20 {dimension_numbers = #tpu.dot_dimension_numbers<[1], [0], [0], [1], [0, 0, 1, 1], [], []>} : vector<8x8xbf16>, vector<8x16xbf16>, vector<8x16xf32> -> vector<8x16xf32>
    %75 = vector.extract_strided_slice %8 {offsets = [8, 16], sizes = [8, 16], strides = [1, 1]} : vector<16x32xf32> to vector<8x16xf32>
    %76 = arith.truncf %75 : vector<8x16xf32> to vector<8x16xbf16>
    %77 = vector.extract_strided_slice %9 {offsets = [8, 16], sizes = [8, 16], strides = [1, 1]} : vector<16x32xf32> to vector<8x16xf32>
    %78 = arith.truncf %77 : vector<8x16xf32> to vector<8x16xbf16>
    %79 = vector.extract_strided_slice %10 {offsets = [8, 16], sizes = [8, 16], strides = [1, 1]} : vector<16x32xf32> to vector<8x16xf32>
    %80 = arith.truncf %79 : vector<8x16xf32> to vector<8x16xbf16>
    %cst_21 = arith.constant dense<0.000000e+00> : vector<8x8xf32>
    %81 = tpu.matmul %76, %78, %cst_21 {dimension_numbers = #tpu.dot_dimension_numbers<[1], [1], [0], [0], [0, 0, 1, 0], [], []>} : vector<8x16xbf16>, vector<8x16xbf16>, vector<8x8xf32> -> vector<8x8xf32>
    %cst_22 = arith.constant 2.500000e-01 : f32
    %82 = vector.broadcast %cst_22 : f32 to vector<8x8xf32>
    %83 = arith.mulf %81, %82 : vector<8x8xf32>
    %cst_23 = arith.constant dense<0xFF800000> : vector<8xf32>
    %84 = vector.multi_reduction <maximumf>, %83, %cst_23 [1] : vector<8x8xf32> to vector<8xf32>
    %85 = vector.shape_cast %84 : vector<8xf32> to vector<8x1xf32>
    %86 = vector.broadcast %85 : vector<8x1xf32> to vector<8x8xf32>
    %87 = arith.subf %83, %86 : vector<8x8xf32>
    %88 = math.exp %87 : vector<8x8xf32>
    %cst_24 = arith.constant dense<0.000000e+00> : vector<8xf32>
    %89 = vector.multi_reduction <add>, %88, %cst_24 [1] : vector<8x8xf32> to vector<8xf32>
    %90 = vector.shape_cast %89 : vector<8xf32> to vector<8x1xf32>
    %91 = tpu.reciprocal %90 {approx = true} : vector<8x1xf32> -> vector<8x1xf32>
    %92 = vector.broadcast %91 : vector<8x1xf32> to vector<8x8xf32>
    %93 = arith.mulf %88, %92 : vector<8x8xf32>
    %94 = arith.truncf %93 : vector<8x8xf32> to vector<8x8xbf16>
    %cst_25 = arith.constant dense<0.000000e+00> : vector<8x16xf32>
    %95 = tpu.matmul %94, %80, %cst_25 {dimension_numbers = #tpu.dot_dimension_numbers<[1], [0], [0], [1], [0, 0, 1, 1], [], []>} : vector<8x8xbf16>, vector<8x16xbf16>, vector<8x16xf32> -> vector<8x16xf32>
    %96 = tpu.concatenate %74, %95 in 1 : vector<8x16xf32>, vector<8x16xf32> -> vector<8x32xf32>
    %97 = tpu.concatenate %53, %96 in 0 : vector<8x32xf32>, vector<8x32xf32> -> vector<16x32xf32>
    %98 = arith.truncf %97 : vector<16x32xf32> to vector<16x32xbf16>
    %c0_26 = arith.constant 0 : index
    %c0_27 = arith.constant 0 : index
    %99 = vector.load %arg4[%c0_26, %c0_27] : memref<32x32xbf16, #tpu.memory_space<vmem>>, vector<32x32xbf16>
    %cst_28 = arith.constant dense<0.000000e+00> : vector<16x32xf32>
    %100 = tpu.matmul %98, %99, %cst_28 {dimension_numbers = #tpu.dot_dimension_numbers<[1], [0], [0], [1], [0, 0, 1, 1], [], []>} : vector<16x32xbf16>, vector<32x32xbf16>, vector<16x32xf32> -> vector<16x32xf32>
    %c0_29 = arith.constant 0 : index
    %c0_30 = arith.constant 0 : index
    %101 = vector.load %arg5[%c0_29, %c0_30] : memref<1x32xf32, #tpu.memory_space<vmem>>, vector<1x32xf32>
    %102 = vector.broadcast %101 : vector<1x32xf32> to vector<16x32xf32>
    %103 = arith.addf %100, %102 : vector<16x32xf32>
    %104 = vector.shape_cast %103 : vector<16x32xf32> to vector<2x8x32xf32>
    %c0_31 = arith.constant 0 : index
    %c0_32 = arith.constant 0 : index
    %c0_33 = arith.constant 0 : index
    %105 = vector.load %arg6[%c0_31, %c0_32, %c0_33] : memref<2x8x32xf32, #tpu.memory_space<vmem>>, vector<2x8x32xf32>
    tpu.vector_store %arg6[%c0_31, %c0_32, %c0_33], %104 {strides = array<i32>} : memref<2x8x32xf32, #tpu.memory_space<vmem>>, vector<2x8x32xf32>,
    return
  }
  func.func @transform_0(%arg0: i32) -> (i32, i32, i32) {
    %c0_i32 = arith.constant 0 : i32
    %c0_i32_0 = arith.constant 0 : i32
    %c0_i32_1 = arith.constant 0 : i32
    return %arg0, %c0_i32, %c0_i32_0 : i32, i32, i32
  }
  func.func @transform_1(%arg0: i32) -> (i32, i32) {
    %c0_i32 = arith.constant 0 : i32
    %c0_i32_0 = arith.constant 0 : i32
    %c0_i32_1 = arith.constant 0 : i32
    return %c0_i32, %c0_i32_0 : i32, i32
  }
  func.func @transform_2(%arg0: i32) -> (i32, i32) {
    %c0_i32 = arith.constant 0 : i32
    %c0_i32_0 = arith.constant 0 : i32
    %c0_i32_1 = arith.constant 0 : i32
    return %c0_i32, %c0_i32_0 : i32, i32
  }
  func.func @transform_3(%arg0: i32) -> (i32, i32) {
    %c0_i32 = arith.constant 0 : i32
    %c0_i32_0 = arith.constant 0 : i32
    %c0_i32_1 = arith.constant 0 : i32
    return %c0_i32, %c0_i32_0 : i32, i32
  }
  func.func @transform_4(%arg0: i32) -> (i32, i32) {
    %c0_i32 = arith.constant 0 : i32
    %c0_i32_0 = arith.constant 0 : i32
    %c0_i32_1 = arith.constant 0 : i32
    return %c0_i32, %c0_i32_0 : i32, i32
  }
  func.func @transform_5(%arg0: i32) -> (i32, i32, i32) {
    %c0_i32 = arith.constant 0 : i32
    %c0_i32_0 = arith.constant 0 : i32
    %c0_i32_1 = arith.constant 0 : i32
    return %arg0, %c0_i32, %c0_i32_0 : i32, i32, i32
  }
}

</mosaic_0001>

<bundles_post_ra>
// kernel: self_attention.1
= control target key start
LH: loop header
LB: loop body
LE: loop exit
PB: predicated region body
PF: predicated region fallthrough
CT: control target
= control target key end

     0   :  { %v798_v1 = vmov 0.0   ;;  %vm799_vm0 = vmmov 0   ;;  %s953_s0 = inlined_call_operand.vmem [shape: f32[2,8,32], index: 0, kind: input, shape index: {}]   ;;  %s954_s1 = inlined_call_operand.vmem [shape: bf16[32,96], index: 1, kind: input, shape index: {}]   ;;  %s955_s2 = inlined_call_operand.vmem [shape: f32[1,96], index: 2, kind: input, shape index: {}]   ;;  %s956_s3 = inlined_call_operand.vmem [shape: bf16[32,32], index: 3, kind: input, shape index: {}]   ;;  %s957_s4 = inlined_call_operand.vmem [shape: f32[1,32], index: 4, kind: input, shape index: {}]   ;;  %s958_s5 = inlined_call_operand.hbm [shape: f32[2,8,32], index: 5, kind: output, shape index: {}]  }
   0x1   :  { %v754_v0 = vld [vmem:[%s954_s1] sm:$0xff]   ;;  %674 = vmatprep.subr.bf16.mxu0 %v798_v1  ;;  %682 = vmatprep.subr.bf16.mxu1 %v798_v1  ;;  %v755_v2 = vld [vmem:[%s954_s1 + $0x8] sm:$0xff]  }
   0x2   :  { %675 = vmatpush3.bf16.msra.mxu0 %v754_v0  ;;  %678 = vmatprep.mubr.msk.bf16.mxu0 %vm799_vm0, %v798_v1  ;;  %v22_v3 = vld [vmem:[%s953_s0] sm:$0xff]  ;;  %v23_v4 = vld [vmem:[%s953_s0 + $0x8] sm:$0xff] }
   0x3   :  { %676 = vmatprep.subr.bf16.mxu0 %v798_v1  ;;  %684 = vmatprep.mubr.msk.bf16.mxu1 %vm799_vm0, %v798_v1 }
   0x4   :  { %10 = vsyncpa [#allocation3], 0  ;;  %v24_v5 = vpack.c.bf16 %v23_v4, %v22_v3  ;;  %vm48_vm1 = vcmask 261120   ;;  %v636_v6 = vld [vmem:[%s955_s2] ss:$0 sm:$0xff]  ;;  %s800_s0 = smov 112  }
   0x5   :  { %s801_s27 = smov 96   ;;  %s802_s28 = smov 80   ;;  %vm97_vm2 = vcmask 130048   ;;  %vm145_vm3 = vcmask 64512   ;;  %vm163_vm4 = vcmask 1043456  }
   0x6   :  { %677 = vmatpush3.bf16.msra.mxu0 %v755_v2  ;;  %s803_s2 = smov 64   ;;  %s804_s29 = smov 48  }
   0x7   :  { %688 = vmatprep.subr.bf16.mxu0 %v798_v1  ;;  %s805_s9 = smov 16   ;;  %s806_s11 = smov [#allocation2]  }
   0x8   :  { %s625_s12 = sshll.u32 %s806_s11, 4  ;;  %s626_s12 = int_to_ptr.vmem [resolvable:$true] %s625_s12 }
   0x9   :  { %679 = vmatmul.mubr.msk.bf16.vlgmr.msra.gmra.mrb[0].mxu0 %vm48_vm1, %v24_v5  ;;  %s774_s13 = scalar_lea.vmem %s626_s12, 256  ;;  %p779_p1 = scmp.lt.s32.totalorder %s626_s12, %s626_s12 }
   0xa   :  { %690 = vmatprep.mubr.msk.bf16.mxu0 %vm799_vm0, %v798_v1  ;;  %p775_p0 = scmp.ne.s32.totalorder %s626_s12, %s774_s13  ;;  %p780_p2 = scmp.lt.s32.totalorder %s774_s13, %s774_s13 }
   0xc   :  { %p781_p3 = por %p780_p2, %p779_p1 }
   0xe   :  { %p782_p4 = pnand %p781_p3, %p775_p0 }
  0xdc   :  { %v86_v7 = vpop.f32.mrb[0].mxu0 }
  0xdd   :  { %v87_v8 = vadd.f32 %v636_v6, %v86_v7  ;;  %v680_v9 = vpop.f32.mrb[1].mxu0 }
  0xde   :  { %v89_v10 = vpop.f32.mrb[2].mxu0 }
  0xdf   :  { %v865_v11 = vpack.c.bf16 %v87_v8, %v87_v8  ;;  %v90_v12 = vadd.f32 %v636_v6, %v89_v10  ;;  %v681_v13 = vpop.f32.mrb[3].mxu0 }
  0xe1   :  { %207 = vrot.lane.b32.xlu1 %v865_v11, %s800_s0  ;;  %95 = vrot.lane.b32.xlu0 %v865_v11, %s801_s27  ;;  %v869_v14 = vpack.c.bf16 %v90_v12, %v90_v12 }
  0xe5   :  { %209 = vrot.lane.b32.xlu0 %v865_v11, %s802_s28  ;;  %325 = vrot.lane.b32.xlu1 %v869_v14, %s801_s27 }
  0xe9   :  { %436 = vrot.lane.b32.xlu0 %v869_v14, %s802_s28  ;;  %434 = vrot.lane.b32.xlu1 %v869_v14, %s800_s0 }
 0x153   :  { %v96_v15 = vpop.permute.xlu0 %95  ;;  %v208_v18 = vpop.permute.xlu1 %207 }
 0x154   :  { %v102_v16 = vsel %vm97_vm2, %v96_v15, 0 }
 0x155   :  { %683 = vmatpush3.bf16.xpose.msra.mxu1 %v102_v16 }
 0x156   :  { %694 = vmatprep.subr.bf16.mxu1 %v798_v1 }
 0x157   :  { %v210_v17 = vpop.permute.xlu0 %209  ;;  %v326_v20 = vpop.permute.xlu1 %325 }
 0x158   :  { %v215_v19 = vsel %vm97_vm2, %v210_v17, 0  ;;  %v331_v21 = vsel %vm97_vm2, %v326_v20, 0 }
 0x15b   :  { %v437_v22 = vpop.permute.xlu0 %436  ;;  %v435_v24 = vpop.permute.xlu1 %434 }
 0x15c   :  { %685 = vmatmul.mubr.msk.bf16.vlgmr.msra.gmra.mrb[0].mxu1 %vm97_vm2, %v865_v11  ;;  %v442_v23 = vsel %vm97_vm2, %v437_v22, 0 }
 0x15d   :  { %695 = vmatpush3.bf16.xpose.msra.mxu1 %v215_v19  ;;  %696 = vmatprep.mubr.msk.bf16.mxu1 %vm799_vm0, %v798_v1 }
 0x15e   :  { %706 = vmatprep.subr.bf16.mxu1 %v798_v1 }
 0x164   :  { %697 = vmatmul.mubr.msk.bf16.vlgmr.msra.gmra.mrb[4].mxu1 %vm97_vm2, %v208_v18 }
 0x165   :  { %707 = vmatpush3.bf16.xpose.msra.mxu1 %v331_v21  ;;  %708 = vmatprep.mubr.msk.bf16.mxu1 %vm799_vm0, %v798_v1 }
 0x166   :  { %718 = vmatprep.subr.bf16.mxu1 %v798_v1 }
 0x16c   :  { %709 = vmatmul.mubr.msk.bf16.vlgmr.msra.gmra.mrb[8].mxu1 %vm97_vm2, %v869_v14 }
 0x16d   :  { %719 = vmatpush3.bf16.xpose.msra.mxu1 %v442_v23  ;;  %720 = vmatprep.mubr.msk.bf16.mxu1 %vm799_vm0, %v798_v1 }
 0x16e   :  { %730 = vmatprep.subr.bf16.mxu1 %v798_v1 }
 0x174   :  { %721 = vmatmul.mubr.msk.bf16.vlgmr.msra.gmra.mrb[12].mxu1 %vm97_vm2, %v435_v24 }
 0x175   :  { %734 = vmatprep.mubr.msk.bf16.mxu1 %vm799_vm0, %v798_v1 }
 0x22f   :  { %v138_v25 = vpop.f32.mrb[0].mxu1 }
 0x230   :  { %v144_v26 = vmul.f32 0.25, %v138_v25  ;;  %v686_v27 = vpop.f32.mrb[1].mxu1 }
 0x231   :  { %v141_v28 = vpop.f32.mrb[2].mxu1 }
 0x232   :  { %v687_v29 = vpop.f32.mrb[3].mxu1  ;;  %v146_v30 = vsel %vm145_vm3, %v144_v26, -inf }
 0x233   :  { %147 = vmax.xlane.f32.xlu0 %v146_v30  ;;  %v756_v30 = vld [vmem:[%s956_s3] sm:$0xff]  }
 0x234   :  { %731 = vmatpush3.bf16.msra.mxu1 %v756_v30 }
 0x235   :  { %732 = vmatprep.subr.bf16.mxu1 %v798_v1 }
 0x237   :  { %v251_v31 = vpop.f32.mrb[4].mxu1 }
 0x238   :  { %v257_v32 = vmul.f32 0.25, %v251_v31  ;;  %v698_v33 = vpop.f32.mrb[5].mxu1 }
 0x239   :  { %v254_v34 = vpop.f32.mrb[6].mxu1 }
 0x23a   :  { %v699_v35 = vpop.f32.mrb[7].mxu1  ;;  %v258_v36 = vsel %vm145_vm3, %v257_v32, -inf }
 0x23b   :  { %259 = vmax.xlane.f32.xlu1 %v258_v36 }
 0x23f   :  { %v367_v37 = vpop.f32.mrb[8].mxu1 }
 0x240   :  { %v373_v38 = vmul.f32 0.25, %v367_v37  ;;  %v710_v39 = vpop.f32.mrb[9].mxu1 }
 0x241   :  { %v370_v40 = vpop.f32.mrb[10].mxu1  ;;  %v757_v39 = vld [vmem:[%s956_s3 + $0x8] sm:$0xff]  }
 0x242   :  { %v711_v41 = vpop.f32.mrb[11].mxu1  ;;  %v374_v42 = vsel %vm145_vm3, %v373_v38, -inf  ;;  %733 = vmatpush3.bf16.msra.mxu1 %v757_v39 }
 0x243   :  { %375 = vmax.xlane.f32.xlu0 %v374_v42 }
 0x247   :  { %v478_v43 = vpop.f32.mrb[12].mxu1 }
 0x248   :  { %v484_v44 = vmul.f32 0.25, %v478_v43  ;;  %v722_v45 = vpop.f32.mrb[13].mxu1 }
 0x249   :  { %v481_v46 = vpop.f32.mrb[14].mxu1 }
 0x24a   :  { %v723_v47 = vpop.f32.mrb[15].mxu1  ;;  %v485_v48 = vsel %vm145_vm3, %v484_v44, -inf }
 0x24b   :  { %486 = vmax.xlane.f32.xlu0 %v485_v48 }
 0x2c0   :  { %v148_v49 = vpop.xlane.xlu0 %147 }
 0x2c1   :  { %v149_v50 = vsub.f32 %v144_v26, %v148_v49 }
 0x2c3   :  { %v150_v51 = vmul.f32 1.442695, %v149_v50 }
 0x2c5   :  { %758 = vpow2.f32 %v150_v51 }
 0x2c8   :  { %v260_v52 = vpop.xlane.xlu1 %259 }
 0x2c9   :  { %v261_v53 = vsub.f32 %v257_v32, %v260_v52 }
 0x2cb   :  { %v262_v54 = vmul.f32 1.442695, %v261_v53 }
 0x2cd   :  { %760 = vpow2.f32 %v262_v54  ;;  %v648_v54 = vld [vmem:[%s957_s4] ss:$0 sm:$0xff] }
 0x2cf   :  { %v759_v55 = vpop.eup %758 }
 0x2d0   :  { %v152_v56 = vsel %vm145_vm3, %v759_v55, 0.0  ;;  %v376_v57 = vpop.xlane.xlu0 %375 }
 0x2d1   :  { %153 = vadd.xlane.f32.xlu1 %v152_v56  ;;  %v377_v2 = vsub.f32 %v373_v38, %v376_v57 }
 0x2d3   :  { %v378_v3 = vmul.f32 1.442695, %v377_v2 }
 0x2d7   :  { %v761_v58 = vpop.eup %760 }
 0x2d8   :  { %v487_v59 = vpop.xlane.xlu0 %486  ;;  %v264_v60 = vsel %vm145_vm3, %v761_v58, 0.0 }
 0x2d9   :  { %v488_v61 = vsub.f32 %v484_v44, %v487_v59  ;;  %265 = vadd.xlane.f32.xlu0 %v264_v60 }
 0x2db   :  { %v489_v62 = vmul.f32 1.442695, %v488_v61 }
 0x2dd   :  { %762 = vpow2.f32 %v489_v62 }
 0x2de   :  { %764 = vpow2.f32 %v378_v3 }
 0x2e2   :  { %158 = vrot.lane.b32.xlu1 %v865_v11, %s803_s2 }
 0x2e7   :  { %v763_v63 = vpop.eup %762 }
 0x2e8   :  { %v491_v0 = vsel %vm145_vm3, %v763_v63, 0.0  ;;  %v765_v4 = vpop.eup %764 }
 0x2e9   :  { %492 = vadd.xlane.f32.xlu0 %v491_v0  ;;  %v380_v5 = vsel %vm145_vm3, %v765_v4, 0.0 }
 0x2ff   :  { %270 = vrot.lane.b32.xlu0 %v865_v11, %s804_s29 }
 0x306   :  { %381 = vadd.xlane.f32.xlu1 %v380_v5 }
 0x317   :  { %386 = vrot.lane.b32.xlu1 %v869_v14, %s803_s2 }
 0x31b   :  { %497 = vrot.lane.b32.xlu1 %v869_v14, %s804_s29 }
 0x35e   :  { %v154_v6 = vpop.xlane.xlu1 %153 }
 0x35f   :  { %766 = vrcp.f32 %v154_v6 }
 0x362   :  { %v159_v7 = vpop.permute.xlu1 %158 }
 0x363   :  { %v165_v8 = vsel %vm163_vm4, %v159_v7, 0 }
 0x364   :  { %689 = vmatpush3.bf16.msra.mxu0 %v165_v8 }
 0x365   :  { %700 = vmatprep.subr.bf16.mxu0 %v798_v1 }
 0x366   :  { %v266_v10 = vpop.xlane.xlu0 %265 }
 0x367   :  { %768 = vrcp.f32 %v266_v10 }
 0x369   :  { %v767_v9 = vpop.eup %766 }
 0x36a   :  { %v156_v11 = vmul.f32 %v767_v9, %v759_v55 }
 0x36c   :  { %v157_v12 = vpack.c.bf16 %v156_v11, %v156_v11 }
 0x36e   :  { %691 = vmatmul.mubr.msk.bf16.vlgmr.msra.gmra.mrb[4].mxu0 %vm145_vm3, %v157_v12 }
 0x36f   :  { %702 = vmatprep.mubr.msk.bf16.mxu0 %vm799_vm0, %v798_v1 }
 0x371   :  { %v769_v13 = vpop.eup %768 }
 0x372   :  { %v268_v15 = vmul.f32 %v769_v13, %v761_v58 }
 0x374   :  { %v269_v18 = vpack.c.bf16 %v268_v15, %v268_v15 }
 0x376   :  { %v493_v14 = vpop.xlane.xlu0 %492 }
 0x37a   :  { %v271_v16 = vpop.permute.xlu0 %270 }
 0x37b   :  { %v276_v17 = vsel %vm163_vm4, %v271_v16, 0 }
 0x37c   :  { %701 = vmatpush3.bf16.msra.mxu0 %v276_v17 }
 0x37d   :  { %712 = vmatprep.subr.bf16.mxu0 %v798_v1 }
 0x37f   :  { %703 = vmatmul.mubr.msk.bf16.vlgmr.msra.gmra.mrb[8].mxu0 %vm145_vm3, %v269_v18 }
 0x380   :  { %714 = vmatprep.mubr.msk.bf16.mxu0 %vm799_vm0, %v798_v1 }
 0x393   :  { %v382_v19 = vpop.xlane.xlu1 %381 }
 0x394   :  { %770 = vrcp.f32 %v382_v19 }
 0x395   :  { %772 = vrcp.f32 %v493_v14 }
 0x397   :  { %v387_v20 = vpop.permute.xlu1 %386 }
 0x398   :  { %v392_v21 = vsel %vm163_vm4, %v387_v20, 0 }
 0x399   :  { %713 = vmatpush3.bf16.msra.mxu0 %v392_v21 }
 0x39a   :  { %724 = vmatprep.subr.bf16.mxu0 %v798_v1 }
 0x39b   :  { %v498_v24 = vpop.permute.xlu1 %497 }
 0x39c   :  { %v503_v27 = vsel %vm163_vm4, %v498_v24, 0 }
 0x39e   :  { %v771_v22 = vpop.eup %770 }
 0x39f   :  { %v384_v23 = vmul.f32 %v771_v22, %v765_v4  ;;  %v773_v26 = vpop.eup %772 }
 0x3a0   :  { %v495_v28 = vmul.f32 %v773_v26, %v763_v63 }
 0x3a1   :  { %v385_v25 = vpack.c.bf16 %v384_v23, %v384_v23 }
 0x3a2   :  { %v496_v29 = vpack.c.bf16 %v495_v28, %v495_v28 }
 0x3a3   :  { %715 = vmatmul.mubr.msk.bf16.vlgmr.msra.gmra.mrb[12].mxu0 %vm145_vm3, %v385_v25 }
 0x3a4   :  { %725 = vmatpush3.bf16.msra.mxu0 %v503_v27  ;;  %726 = vmatprep.mubr.msk.bf16.mxu0 %vm799_vm0, %v798_v1 }
 0x3ab   :  { %727 = vmatmul.mubr.msk.bf16.vlgmr.msra.gmra.mrb[16].mxu0 %vm145_vm3, %v496_v29 }
 0x441   :  { %v201_v31 = vpop.f32.mrb[4].mxu0 }
 0x442   :  { %v692_v32 = vpop.f32.mrb[5].mxu0 }
 0x443   :  { %v204_v33 = vpop.f32.mrb[6].mxu0 }
 0x444   :  { %v693_v34 = vpop.f32.mrb[7].mxu0 }
 0x452   :  { %v312_v35 = vpop.f32.mrb[8].mxu0 }
 0x453   :  { %v704_v36 = vpop.f32.mrb[9].mxu0 }
 0x454   :  { %v315_v37 = vpop.f32.mrb[10].mxu0 }
 0x455   :  { %v705_v38 = vpop.f32.mrb[11].mxu0 }
 0x476   :  { %v428_v40 = vpop.f32.mrb[12].mxu0 }
 0x477   :  { %v716_v41 = vpop.f32.mrb[13].mxu0 }
 0x478   :  { %v431_v42 = vpop.f32.mrb[14].mxu0 }
 0x479   :  { %v717_v43 = vpop.f32.mrb[15].mxu0 }
 0x47e   :  { %v539_v44 = vpop.f32.mrb[16].mxu0 }
 0x47f   :  { %v749_v45 = vpack.i.bf16 %v539_v44, %v312_v35  ;;  %v728_v1 = vpop.f32.mrb[17].mxu0 }
 0x480   :  { %v542_v46 = vpop.f32.mrb[18].mxu0 }
 0x481   :  { %750 = vrot.lane.b32.xlu0 %v749_v45, %s805_s9  ;;  %v729_v47 = vpop.f32.mrb[19].mxu0 }
 0x4f3   :  { %v751_v48 = vpop.permute.xlu0 %750 }
 0x4f4   :  { %v753_v49 = vunpack.i.h.bf16 %v751_v48  ;;  %v752_v50 = vunpack.i.l.bf16 %v751_v48 }
 0x4f6   :  { %v549_v51 = vsel %vm97_vm2, %v428_v40, %v753_v49  ;;  %v322_v52 = vsel %vm97_vm2, %v201_v31, %v752_v50 }
 0x4f7   :  { %v550_v53 = vpack.c.bf16 %v549_v51, %v322_v52 }
 0x4f9   :  { %735 = vmatmul.mubr.msk.bf16.vlgmr.msra.gmra.mrb[16].mxu1 %vm48_vm1, %v550_v53 }
 0x5cc   :  { %v611_v55 = vpop.f32.mrb[16].mxu1 }
 0x5cd   :  { %v612_v56 = vadd.f32 %v648_v54, %v611_v55  ;;  %v736_v57 = vpop.f32.mrb[17].mxu1 }
 0x5ce   :  { %v614_v58 = vpop.f32.mrb[18].mxu1 }
 0x5cf   :  { %618 = vst.msk [vmem:[#allocation2] sm:$0xff] %vm48_vm1, %v612_v56  ;;  %v615_v59 = vadd.f32 %v648_v54, %v614_v58  ;;  %v737_v60 = vpop.f32.mrb[19].mxu1 }
 0x5d1   :  { %619 = vst.msk [vmem:[#allocation2 + $0x8] sm:$0xff] %vm48_vm1, %v615_v59 }
 0x5d2   :  { %785 = shalt.err (!%p782_p4)
}
 0x5d3   :  { %s786_s15 = scalar_lea.hbm %s958_s5, 256 }
 0x5d4   :  { %p787_p5 = scmp.ne.s32.totalorder %s958_s5, %s786_s15  ;;  %p790_p6 = scmp.lt.u32.totalorder %s786_s15, %s958_s5 }
 0x5d6   :  { %p792_p7 = pnand %p790_p6, %p787_p5 }
 0x5d8   :  { %795 = shalt.err (!%p792_p7)
}
 0x5d9   :  { %s807_s20 = smov 128   ;;  %s808_s21 = smov 8  }
 0x5da   :  { %631 = dma.vmem_to_hbm [thread:$0]  %s626_s12, 256, %s958_s5, [#allocation3], %s807_s20, %s807_s20, %s808_s21  }
 0x5db   :  { %796 = dma.done.wait [#allocation3], 256  }
 0x5dc   :  { %797 = vsyncadd [#allocation3], 4294967040 }
 0x5dd   :  { %635 = vsyncpa [#allocation3], 1 }

</bundles_post_ra>
